<compile_context>
chip_gen: v5e
topology: v5e:2x2
jax: 0.10.0
libtpu: 0.0.40
codegen_flags: <defaults>
</compile_context>

<pallas_src>
import jax
import jax.numpy as jnp
from jax.experimental import pallas as pl
from jax.experimental.pallas import tpu as pltpu

NEG_SLOPE = 0.01
_LANE = 128   # lane width
_SUB = 8      # sublane quantum


def _mlp_kernel(x_ref, w1_ref, b1_ref, w2_ref, b2_ref, w3_ref, b3_ref, o_ref):
    """One (din, tile_rows, 128) block of the channels-first MLP.

    x_ref/o_ref: VMEM blocks (din|dout, tile_rows, 128).
    w*_ref/b*_ref: whole (in, out) weights / (out,) biases resident in SMEM.
    """

    def read(w_ref, b_ref):
        n_in, n_out = w_ref.shape
        w = [[w_ref[i, j] for j in range(n_out)] for i in range(n_in)]
        b = [b_ref[j] for j in range(n_out)]
        return w, b

    # Hoist every SMEM scalar read (and its vector splat) above the FMA chains.
    w1, b1 = read(w1_ref, b1_ref)
    w2, b2 = read(w2_ref, b2_ref)
    w3, b3 = read(w3_ref, b3_ref)

    def dense(planes, w, b):
        n_in, n_out = len(w), len(b)
        outs = []
        for j in range(n_out):
            # scalar-weight FMA chain on fully lane-dense (tile_rows, 128) vregs
            acc = planes[0] * w[0][j] + b[j]
            for i in range(1, n_in):
                acc = acc + planes[i] * w[i][j]
            outs.append(acc)
        return outs

    def leaky(planes):
        # mul + max (2 VPU ops) instead of cmp + mul + select (3 ops).
        return [jnp.maximum(v, NEG_SLOPE * v) for v in planes]

    planes = [x_ref[i] for i in range(x_ref.shape[0])]    # each (tile_rows, 128)
    h = leaky(dense(planes, w1, b1))                      # Linear + LeakyReLU
    h = leaky(dense(h, w2, b2))                           # Linear + LeakyReLU
    h = dense(h, w3, b3)                                  # Linear
    for j, v in enumerate(h):
        o_ref[j] = jnp.tanh(v)                            # Tanh (EUP)


def simple_viz_generator(x, params, *, max_tile_rows=4096):
    """x: (N, S, dim_in) float32 -> (N, S, dim_out) float32."""
    w1, b1, w2, b2, w3, b3 = params
    N, S, din = x.shape
    dout = w3.shape[1]
    M = N * S

    # Lane-dense bookkeeping: 128 samples per row, rows in sublane (8) quanta.
    rows = pl.cdiv(pl.cdiv(M, _LANE), _SUB) * _SUB

    # Pick the block count first, then split rows evenly:
    #  - tiles up to max_tile_rows amortize the ~0.35 us per-grid-step cost,
    #  - >=2 blocks whenever possible so both v7x TensorCores get work,
    #  - padding never exceeds one sublane quantum per block.
    max_tile = max(_SUB, (max_tile_rows // _SUB) * _SUB)
    n_blocks = pl.cdiv(rows, max_tile)
    if rows >= 2 * _SUB:
        n_blocks = max(n_blocks, 2)
    tile_rows = pl.cdiv(pl.cdiv(rows, n_blocks), _SUB) * _SUB
    rows = tile_rows * n_blocks
    m_pad = rows * _LANE

    # Channels-first, lane-dense slab: (din, rows, 128).
    x_cf = jnp.transpose(x.reshape(M, din))               # (din, M)
    x_cf = jnp.pad(x_cf, ((0, 0), (0, m_pad - M)))
    x_blk = x_cf.reshape(din, rows, _LANE)

    # Pipelined VMEM footprint: double-buffered (in + out) blocks, plus
    # headroom for Mosaic internal scratch.  Explicit so v5e's 16 MiB scoped
    # default doesn't force smaller pipelining; stays inside v7x's 64 MiB.
    block_bytes = (din + dout) * tile_rows * _LANE * 4
    vmem_limit = int(min(2 * block_bytes + (8 << 20), 48 << 20))

    smem = pl.BlockSpec(memory_space=pltpu.MemorySpace.SMEM)

    out_blk = pl.pallas_call(
        _mlp_kernel,
        out_shape=jax.ShapeDtypeStruct((dout, rows, _LANE), jnp.float32),
        grid=(n_blocks,),
        in_specs=[
            pl.BlockSpec((din, tile_rows, _LANE), lambda i: (0, i, 0)),
            smem, smem, smem, smem, smem, smem,
        ],
        out_specs=pl.BlockSpec((dout, tile_rows, _LANE), lambda i: (0, i, 0)),
        compiler_params=pltpu.CompilerParams(
            dimension_semantics=("parallel",),
            vmem_limit_bytes=vmem_limit,
            # Permit XLA to fuse the transpose/pad producer of the activation
            # slab into the Mosaic call rather than materializing it in HBM.
            allow_input_fusion=[True, False, False, False, False, False, False],
        ),
        cost_estimate=pl.CostEstimate(
            flops=66 * m_pad,                       # 3x(3x3 FMA) + 2x LeakyReLU
            transcendentals=dout * m_pad,           # tanh
            bytes_accessed=(din + dout) * 4 * m_pad),
    )(x_blk, w1, b1, w2, b2, w3, b3)

    out = out_blk.reshape(dout, m_pad)[:, :M]              # (dout, M)
    # TODO(synk): this epilogue transpose (and the prologue one above) goes
    # away entirely if the surrounding model keeps activations channels-first.
    return jnp.transpose(out).reshape(N, S, dout)


def init_params(key, dim_in=3, dim_h=3, dim_out=3):
    """Deterministic init; weights kept as (in, out) = PyTorch weight.T."""
    ks = jax.random.split(key, 6)

    def linear(kw, kb, fan_in, fan_out):
        # PyTorch nn.Linear default: U(-1/sqrt(fan_in), 1/sqrt(fan_in))
        bound = 1.0 / jnp.sqrt(fan_in)
        w = jax.random.uniform(kw, (fan_in, fan_out), jnp.float32, -bound, bound)
        b = jax.random.uniform(kb, (fan_out,), jnp.float32, -bound, bound)
        return w, b

    w1, b1 = linear(ks[0], ks[1], dim_in, dim_h)
    w2, b2 = linear(ks[2], ks[3], dim_h, dim_h)
    w3, b3 = linear(ks[4], ks[5], dim_h, dim_out)
    return (w1, b1, w2, b2, w3, b3)


def _reference(x, params):
    """Plain-JAX reference of the same MLP (sanity check)."""
    w1, b1, w2, b2, w3, b3 = params
    h = x @ w1 + b1
    h = jnp.where(h > 0, h, NEG_SLOPE * h)
    h = h @ w2 + b2
    h = jnp.where(h > 0, h, NEG_SLOPE * h)
    h = h @ w3 + b3
    return jnp.tanh(h)


if __name__ == "__main__":
    key = jax.random.PRNGKey(0)
    k_x, k_p = jax.random.split(key)

    # (N, sample_size, dim_in) as implied by the module's forward docstring.
    N, S, dim_in, dim_h, dim_out = 2, 8, 3, 3, 3
    x = jax.random.normal(k_x, (N, S, dim_in), dtype=jnp.float32)
    params = init_params(k_p, dim_in, dim_h, dim_out)

    latent = simple_viz_generator(x, params)
    jax.block_until_ready(latent)
    ref = _reference(x, params)
    assert latent.shape == (N, S, dim_out)
    assert jnp.allclose(latent, ref, atol=1e-5, rtol=1e-5)

    # Two-block / megacore path with the default tile sizing.
    x2 = jax.random.normal(k_x, (2, 2048, dim_in), dtype=jnp.float32)
    lat2 = simple_viz_generator(x2, params)
    jax.block_until_ready(lat2)
    assert jnp.allclose(lat2, _reference(x2, params), atol=1e-5, rtol=1e-5)

    # Multi-block grid + ragged-padding path with a tiny tile.
    x3 = jax.random.normal(k_x, (3, 1000, dim_in), dtype=jnp.float32)
    lat3 = simple_viz_generator(x3, params, max_tile_rows=8)
    jax.block_until_ready(lat3)
    assert jnp.allclose(lat3, _reference(x3, params), atol=1e-5, rtol=1e-5)

    print("KERNEL_OK")
</pallas_src>

<mosaic_0001>
module attributes {stable_mosaic.version = 11 : i64} {
  func.func @_mlp_kernel(%arg0: i32, %arg1: memref<3x8x128xf32, #tpu.memory_space<vmem>>, %arg2: memref<3x3xf32, #tpu.memory_space<smem>>, %arg3: memref<3xf32, #tpu.memory_space<smem>>, %arg4: memref<3x3xf32, #tpu.memory_space<smem>>, %arg5: memref<3xf32, #tpu.memory_space<smem>>, %arg6: memref<3x3xf32, #tpu.memory_space<smem>>, %arg7: memref<3xf32, #tpu.memory_space<smem>>, %arg8: memref<3x8x128xf32, #tpu.memory_space<vmem>>) attributes {dimension_semantics = [#tpu.dimension_semantics<parallel>], iteration_bounds = array<i64: 1>, scalar_prefetch = 0 : i64, scratch_operands = 0 : i64, tpu.core_type = #tpu.core_type<tc>, window_params = [{transform_indices = @transform_0, window_bounds = array<i64: 3, 8, 128>}, {transform_indices = @transform_1, window_bounds = array<i64: 3, 3>}, {transform_indices = @transform_2, window_bounds = array<i64: 3>}, {transform_indices = @transform_3, window_bounds = array<i64: 3, 3>}, {transform_indices = @transform_4, window_bounds = array<i64: 3>}, {transform_indices = @transform_5, window_bounds = array<i64: 3, 3>}, {transform_indices = @transform_6, window_bounds = array<i64: 3>}, {transform_indices = @transform_7, window_bounds = array<i64: 3, 8, 128>}]} {
    %c0 = arith.constant 0 : index
    %c0_0 = arith.constant 0 : index
    %0 = memref.load %arg2[%c0, %c0_0] : memref<3x3xf32, #tpu.memory_space<smem>>
    %c0_1 = arith.constant 0 : index
    %c1 = arith.constant 1 : index
    %1 = memref.load %arg2[%c0_1, %c1] : memref<3x3xf32, #tpu.memory_space<smem>>
    %c0_2 = arith.constant 0 : index
    %c2 = arith.constant 2 : index
    %2 = memref.load %arg2[%c0_2, %c2] : memref<3x3xf32, #tpu.memory_space<smem>>
    %c1_3 = arith.constant 1 : index
    %c0_4 = arith.constant 0 : index
    %3 = memref.load %arg2[%c1_3, %c0_4] : memref<3x3xf32, #tpu.memory_space<smem>>
    %c1_5 = arith.constant 1 : index
    %c1_6 = arith.constant 1 : index
    %4 = memref.load %arg2[%c1_5, %c1_6] : memref<3x3xf32, #tpu.memory_space<smem>>
    %c1_7 = arith.constant 1 : index
    %c2_8 = arith.constant 2 : index
    %5 = memref.load %arg2[%c1_7, %c2_8] : memref<3x3xf32, #tpu.memory_space<smem>>
    %c2_9 = arith.constant 2 : index
    %c0_10 = arith.constant 0 : index
    %6 = memref.load %arg2[%c2_9, %c0_10] : memref<3x3xf32, #tpu.memory_space<smem>>
    %c2_11 = arith.constant 2 : index
    %c1_12 = arith.constant 1 : index
    %7 = memref.load %arg2[%c2_11, %c1_12] : memref<3x3xf32, #tpu.memory_space<smem>>
    %c2_13 = arith.constant 2 : index
    %c2_14 = arith.constant 2 : index
    %8 = memref.load %arg2[%c2_13, %c2_14] : memref<3x3xf32, #tpu.memory_space<smem>>
    %c0_15 = arith.constant 0 : index
    %9 = memref.load %arg3[%c0_15] : memref<3xf32, #tpu.memory_space<smem>>
    %c1_16 = arith.constant 1 : index
    %10 = memref.load %arg3[%c1_16] : memref<3xf32, #tpu.memory_space<smem>>
    %c2_17 = arith.constant 2 : index
    %11 = memref.load %arg3[%c2_17] : memref<3xf32, #tpu.memory_space<smem>>
    %c0_18 = arith.constant 0 : index
    %c0_19 = arith.constant 0 : index
    %12 = memref.load %arg4[%c0_18, %c0_19] : memref<3x3xf32, #tpu.memory_space<smem>>
    %c0_20 = arith.constant 0 : index
    %c1_21 = arith.constant 1 : index
    %13 = memref.load %arg4[%c0_20, %c1_21] : memref<3x3xf32, #tpu.memory_space<smem>>
    %c0_22 = arith.constant 0 : index
    %c2_23 = arith.constant 2 : index
    %14 = memref.load %arg4[%c0_22, %c2_23] : memref<3x3xf32, #tpu.memory_space<smem>>
    %c1_24 = arith.constant 1 : index
    %c0_25 = arith.constant 0 : index
    %15 = memref.load %arg4[%c1_24, %c0_25] : memref<3x3xf32, #tpu.memory_space<smem>>
    %c1_26 = arith.constant 1 : index
    %c1_27 = arith.constant 1 : index
    %16 = memref.load %arg4[%c1_26, %c1_27] : memref<3x3xf32, #tpu.memory_space<smem>>
    %c1_28 = arith.constant 1 : index
    %c2_29 = arith.constant 2 : index
    %17 = memref.load %arg4[%c1_28, %c2_29] : memref<3x3xf32, #tpu.memory_space<smem>>
    %c2_30 = arith.constant 2 : index
    %c0_31 = arith.constant 0 : index
    %18 = memref.load %arg4[%c2_30, %c0_31] : memref<3x3xf32, #tpu.memory_space<smem>>
    %c2_32 = arith.constant 2 : index
    %c1_33 = arith.constant 1 : index
    %19 = memref.load %arg4[%c2_32, %c1_33] : memref<3x3xf32, #tpu.memory_space<smem>>
    %c2_34 = arith.constant 2 : index
    %c2_35 = arith.constant 2 : index
    %20 = memref.load %arg4[%c2_34, %c2_35] : memref<3x3xf32, #tpu.memory_space<smem>>
    %c0_36 = arith.constant 0 : index
    %21 = memref.load %arg5[%c0_36] : memref<3xf32, #tpu.memory_space<smem>>
    %c1_37 = arith.constant 1 : index
    %22 = memref.load %arg5[%c1_37] : memref<3xf32, #tpu.memory_space<smem>>
    %c2_38 = arith.constant 2 : index
    %23 = memref.load %arg5[%c2_38] : memref<3xf32, #tpu.memory_space<smem>>
    %c0_39 = arith.constant 0 : index
    %c0_40 = arith.constant 0 : index
    %24 = memref.load %arg6[%c0_39, %c0_40] : memref<3x3xf32, #tpu.memory_space<smem>>
    %c0_41 = arith.constant 0 : index
    %c1_42 = arith.constant 1 : index
    %25 = memref.load %arg6[%c0_41, %c1_42] : memref<3x3xf32, #tpu.memory_space<smem>>
    %c0_43 = arith.constant 0 : index
    %c2_44 = arith.constant 2 : index
    %26 = memref.load %arg6[%c0_43, %c2_44] : memref<3x3xf32, #tpu.memory_space<smem>>
    %c1_45 = arith.constant 1 : index
    %c0_46 = arith.constant 0 : index
    %27 = memref.load %arg6[%c1_45, %c0_46] : memref<3x3xf32, #tpu.memory_space<smem>>
    %c1_47 = arith.constant 1 : index
    %c1_48 = arith.constant 1 : index
    %28 = memref.load %arg6[%c1_47, %c1_48] : memref<3x3xf32, #tpu.memory_space<smem>>
    %c1_49 = arith.constant 1 : index
    %c2_50 = arith.constant 2 : index
    %29 = memref.load %arg6[%c1_49, %c2_50] : memref<3x3xf32, #tpu.memory_space<smem>>
    %c2_51 = arith.constant 2 : index
    %c0_52 = arith.constant 0 : index
    %30 = memref.load %arg6[%c2_51, %c0_52] : memref<3x3xf32, #tpu.memory_space<smem>>
    %c2_53 = arith.constant 2 : index
    %c1_54 = arith.constant 1 : index
    %31 = memref.load %arg6[%c2_53, %c1_54] : memref<3x3xf32, #tpu.memory_space<smem>>
    %c2_55 = arith.constant 2 : index
    %c2_56 = arith.constant 2 : index
    %32 = memref.load %arg6[%c2_55, %c2_56] : memref<3x3xf32, #tpu.memory_space<smem>>
    %c0_57 = arith.constant 0 : index
    %33 = memref.load %arg7[%c0_57] : memref<3xf32, #tpu.memory_space<smem>>
    %c1_58 = arith.constant 1 : index
    %34 = memref.load %arg7[%c1_58] : memref<3xf32, #tpu.memory_space<smem>>
    %c2_59 = arith.constant 2 : index
    %35 = memref.load %arg7[%c2_59] : memref<3xf32, #tpu.memory_space<smem>>
    %c0_60 = arith.constant 0 : index
    %c0_61 = arith.constant 0 : index
    %c0_62 = arith.constant 0 : index
    %36 = vector.load %arg1[%c0_60, %c0_61, %c0_62] : memref<3x8x128xf32, #tpu.memory_space<vmem>>, vector<1x8x128xf32>
    %37 = vector.shape_cast %36 : vector<1x8x128xf32> to vector<8x128xf32>
    %c1_63 = arith.constant 1 : index
    %c0_64 = arith.constant 0 : index
    %c0_65 = arith.constant 0 : index
    %38 = vector.load %arg1[%c1_63, %c0_64, %c0_65] : memref<3x8x128xf32, #tpu.memory_space<vmem>>, vector<1x8x128xf32>
    %39 = vector.shape_cast %38 : vector<1x8x128xf32> to vector<8x128xf32>
    %c2_66 = arith.constant 2 : index
    %c0_67 = arith.constant 0 : index
    %c0_68 = arith.constant 0 : index
    %40 = vector.load %arg1[%c2_66, %c0_67, %c0_68] : memref<3x8x128xf32, #tpu.memory_space<vmem>>, vector<1x8x128xf32>
    %41 = vector.shape_cast %40 : vector<1x8x128xf32> to vector<8x128xf32>
    %42 = vector.broadcast %0 : f32 to vector<8x128xf32>
    %43 = arith.mulf %37, %42 : vector<8x128xf32>
    %44 = vector.broadcast %9 : f32 to vector<8x128xf32>
    %45 = arith.addf %43, %44 : vector<8x128xf32>
    %46 = vector.broadcast %3 : f32 to vector<8x128xf32>
    %47 = arith.mulf %39, %46 : vector<8x128xf32>
    %48 = arith.addf %45, %47 : vector<8x128xf32>
    %49 = vector.broadcast %6 : f32 to vector<8x128xf32>
    %50 = arith.mulf %41, %49 : vector<8x128xf32>
    %51 = arith.addf %48, %50 : vector<8x128xf32>
    %52 = vector.broadcast %1 : f32 to vector<8x128xf32>
    %53 = arith.mulf %37, %52 : vector<8x128xf32>
    %54 = vector.broadcast %10 : f32 to vector<8x128xf32>
    %55 = arith.addf %53, %54 : vector<8x128xf32>
    %56 = vector.broadcast %4 : f32 to vector<8x128xf32>
    %57 = arith.mulf %39, %56 : vector<8x128xf32>
    %58 = arith.addf %55, %57 : vector<8x128xf32>
    %59 = vector.broadcast %7 : f32 to vector<8x128xf32>
    %60 = arith.mulf %41, %59 : vector<8x128xf32>
    %61 = arith.addf %58, %60 : vector<8x128xf32>
    %62 = vector.broadcast %2 : f32 to vector<8x128xf32>
    %63 = arith.mulf %37, %62 : vector<8x128xf32>
    %64 = vector.broadcast %11 : f32 to vector<8x128xf32>
    %65 = arith.addf %63, %64 : vector<8x128xf32>
    %66 = vector.broadcast %5 : f32 to vector<8x128xf32>
    %67 = arith.mulf %39, %66 : vector<8x128xf32>
    %68 = arith.addf %65, %67 : vector<8x128xf32>
    %69 = vector.broadcast %8 : f32 to vector<8x128xf32>
    %70 = arith.mulf %41, %69 : vector<8x128xf32>
    %71 = arith.addf %68, %70 : vector<8x128xf32>
    %cst = arith.constant 0.00999999977 : f32
    %72 = vector.broadcast %cst : f32 to vector<8x128xf32>
    %73 = arith.mulf %72, %51 : vector<8x128xf32>
    %74 = arith.maximumf %51, %73 : vector<8x128xf32>
    %cst_69 = arith.constant 0.00999999977 : f32
    %75 = vector.broadcast %cst_69 : f32 to vector<8x128xf32>
    %76 = arith.mulf %75, %61 : vector<8x128xf32>
    %77 = arith.maximumf %61, %76 : vector<8x128xf32>
    %cst_70 = arith.constant 0.00999999977 : f32
    %78 = vector.broadcast %cst_70 : f32 to vector<8x128xf32>
    %79 = arith.mulf %78, %71 : vector<8x128xf32>
    %80 = arith.maximumf %71, %79 : vector<8x128xf32>
    %81 = vector.broadcast %12 : f32 to vector<8x128xf32>
    %82 = arith.mulf %74, %81 : vector<8x128xf32>
    %83 = vector.broadcast %21 : f32 to vector<8x128xf32>
    %84 = arith.addf %82, %83 : vector<8x128xf32>
    %85 = vector.broadcast %15 : f32 to vector<8x128xf32>
    %86 = arith.mulf %77, %85 : vector<8x128xf32>
    %87 = arith.addf %84, %86 : vector<8x128xf32>
    %88 = vector.broadcast %18 : f32 to vector<8x128xf32>
    %89 = arith.mulf %80, %88 : vector<8x128xf32>
    %90 = arith.addf %87, %89 : vector<8x128xf32>
    %91 = vector.broadcast %13 : f32 to vector<8x128xf32>
    %92 = arith.mulf %74, %91 : vector<8x128xf32>
    %93 = vector.broadcast %22 : f32 to vector<8x128xf32>
    %94 = arith.addf %92, %93 : vector<8x128xf32>
    %95 = vector.broadcast %16 : f32 to vector<8x128xf32>
    %96 = arith.mulf %77, %95 : vector<8x128xf32>
    %97 = arith.addf %94, %96 : vector<8x128xf32>
    %98 = vector.broadcast %19 : f32 to vector<8x128xf32>
    %99 = arith.mulf %80, %98 : vector<8x128xf32>
    %100 = arith.addf %97, %99 : vector<8x128xf32>
    %101 = vector.broadcast %14 : f32 to vector<8x128xf32>
    %102 = arith.mulf %74, %101 : vector<8x128xf32>
    %103 = vector.broadcast %23 : f32 to vector<8x128xf32>
    %104 = arith.addf %102, %103 : vector<8x128xf32>
    %105 = vector.broadcast %17 : f32 to vector<8x128xf32>
    %106 = arith.mulf %77, %105 : vector<8x128xf32>
    %107 = arith.addf %104, %106 : vector<8x128xf32>
    %108 = vector.broadcast %20 : f32 to vector<8x128xf32>
    %109 = arith.mulf %80, %108 : vector<8x128xf32>
    %110 = arith.addf %107, %109 : vector<8x128xf32>
    %cst_71 = arith.constant 0.00999999977 : f32
    %111 = vector.broadcast %cst_71 : f32 to vector<8x128xf32>
    %112 = arith.mulf %111, %90 : vector<8x128xf32>
    %113 = arith.maximumf %90, %112 : vector<8x128xf32>
    %cst_72 = arith.constant 0.00999999977 : f32
    %114 = vector.broadcast %cst_72 : f32 to vector<8x128xf32>
    %115 = arith.mulf %114, %100 : vector<8x128xf32>
    %116 = arith.maximumf %100, %115 : vector<8x128xf32>
    %cst_73 = arith.constant 0.00999999977 : f32
    %117 = vector.broadcast %cst_73 : f32 to vector<8x128xf32>
    %118 = arith.mulf %117, %110 : vector<8x128xf32>
    %119 = arith.maximumf %110, %118 : vector<8x128xf32>
    %120 = vector.broadcast %24 : f32 to vector<8x128xf32>
    %121 = arith.mulf %113, %120 : vector<8x128xf32>
    %122 = vector.broadcast %33 : f32 to vector<8x128xf32>
    %123 = arith.addf %121, %122 : vector<8x128xf32>
    %124 = vector.broadcast %27 : f32 to vector<8x128xf32>
    %125 = arith.mulf %116, %124 : vector<8x128xf32>
    %126 = arith.addf %123, %125 : vector<8x128xf32>
    %127 = vector.broadcast %30 : f32 to vector<8x128xf32>
    %128 = arith.mulf %119, %127 : vector<8x128xf32>
    %129 = arith.addf %126, %128 : vector<8x128xf32>
    %130 = vector.broadcast %25 : f32 to vector<8x128xf32>
    %131 = arith.mulf %113, %130 : vector<8x128xf32>
    %132 = vector.broadcast %34 : f32 to vector<8x128xf32>
    %133 = arith.addf %131, %132 : vector<8x128xf32>
    %134 = vector.broadcast %28 : f32 to vector<8x128xf32>
    %135 = arith.mulf %116, %134 : vector<8x128xf32>
    %136 = arith.addf %133, %135 : vector<8x128xf32>
    %137 = vector.broadcast %31 : f32 to vector<8x128xf32>
    %138 = arith.mulf %119, %137 : vector<8x128xf32>
    %139 = arith.addf %136, %138 : vector<8x128xf32>
    %140 = vector.broadcast %26 : f32 to vector<8x128xf32>
    %141 = arith.mulf %113, %140 : vector<8x128xf32>
    %142 = vector.broadcast %35 : f32 to vector<8x128xf32>
    %143 = arith.addf %141, %142 : vector<8x128xf32>
    %144 = vector.broadcast %29 : f32 to vector<8x128xf32>
    %145 = arith.mulf %116, %144 : vector<8x128xf32>
    %146 = arith.addf %143, %145 : vector<8x128xf32>
    %147 = vector.broadcast %32 : f32 to vector<8x128xf32>
    %148 = arith.mulf %119, %147 : vector<8x128xf32>
    %149 = arith.addf %146, %148 : vector<8x128xf32>
    %150 = math.tanh %129 : vector<8x128xf32>
    %c0_74 = arith.constant 0 : index
    %c0_75 = arith.constant 0 : index
    %c0_76 = arith.constant 0 : index
    %151 = vector.load %arg8[%c0_74, %c0_75, %c0_76] : memref<3x8x128xf32, #tpu.memory_space<vmem>>, vector<1x8x128xf32>
    %152 = vector.shape_cast %151 : vector<1x8x128xf32> to vector<8x128xf32>
    %153 = vector.shape_cast %150 : vector<8x128xf32> to vector<1x8x128xf32>
    tpu.vector_store %arg8[%c0_74, %c0_75, %c0_76], %153 {strides = array<i32>} : memref<3x8x128xf32, #tpu.memory_space<vmem>>, vector<1x8x128xf32>,
    %154 = math.tanh %139 : vector<8x128xf32>
    %c1_77 = arith.constant 1 : index
    %c0_78 = arith.constant 0 : index
    %c0_79 = arith.constant 0 : index
    %155 = vector.load %arg8[%c1_77, %c0_78, %c0_79] : memref<3x8x128xf32, #tpu.memory_space<vmem>>, vector<1x8x128xf32>
    %156 = vector.shape_cast %155 : vector<1x8x128xf32> to vector<8x128xf32>
    %157 = vector.shape_cast %154 : vector<8x128xf32> to vector<1x8x128xf32>
    tpu.vector_store %arg8[%c1_77, %c0_78, %c0_79], %157 {strides = array<i32>} : memref<3x8x128xf32, #tpu.memory_space<vmem>>, vector<1x8x128xf32>,
    %158 = math.tanh %149 : vector<8x128xf32>
    %c2_80 = arith.constant 2 : index
    %c0_81 = arith.constant 0 : index
    %c0_82 = arith.constant 0 : index
    %159 = vector.load %arg8[%c2_80, %c0_81, %c0_82] : memref<3x8x128xf32, #tpu.memory_space<vmem>>, vector<1x8x128xf32>
    %160 = vector.shape_cast %159 : vector<1x8x128xf32> to vector<8x128xf32>
    %161 = vector.shape_cast %158 : vector<8x128xf32> to vector<1x8x128xf32>
    tpu.vector_store %arg8[%c2_80, %c0_81, %c0_82], %161 {strides = array<i32>} : memref<3x8x128xf32, #tpu.memory_space<vmem>>, vector<1x8x128xf32>,
    return
  }
  func.func @transform_0(%arg0: i32) -> (i32, i32, i32) {
    %c0_i32 = arith.constant 0 : i32
    %c0_i32_0 = arith.constant 0 : i32
    %c0_i32_1 = arith.constant 0 : i32
    return %c0_i32, %arg0, %c0_i32_0 : i32, i32, i32
  }
  func.func @transform_1(%arg0: i32) -> (i32, i32) {
    %c0_i32 = arith.constant 0 : i32
    %c0_i32_0 = arith.constant 0 : i32
    %c0_i32_1 = arith.constant 0 : i32
    return %c0_i32, %c0_i32_0 : i32, i32
  }
  func.func @transform_2(%arg0: i32) -> i32 {
    %c0_i32 = arith.constant 0 : i32
    %c0_i32_0 = arith.constant 0 : i32
    return %c0_i32 : i32
  }
  func.func @transform_3(%arg0: i32) -> (i32, i32) {
    %c0_i32 = arith.constant 0 : i32
    %c0_i32_0 = arith.constant 0 : i32
    %c0_i32_1 = arith.constant 0 : i32
    return %c0_i32, %c0_i32_0 : i32, i32
  }
  func.func @transform_4(%arg0: i32) -> i32 {
    %c0_i32 = arith.constant 0 : i32
    %c0_i32_0 = arith.constant 0 : i32
    return %c0_i32 : i32
  }
  func.func @transform_5(%arg0: i32) -> (i32, i32) {
    %c0_i32 = arith.constant 0 : i32
    %c0_i32_0 = arith.constant 0 : i32
    %c0_i32_1 = arith.constant 0 : i32
    return %c0_i32, %c0_i32_0 : i32, i32
  }
  func.func @transform_6(%arg0: i32) -> i32 {
    %c0_i32 = arith.constant 0 : i32
    %c0_i32_0 = arith.constant 0 : i32
    return %c0_i32 : i32
  }
  func.func @transform_7(%arg0: i32) -> (i32, i32, i32) {
    %c0_i32 = arith.constant 0 : i32
    %c0_i32_0 = arith.constant 0 : i32
    %c0_i32_1 = arith.constant 0 : i32
    return %c0_i32, %arg0, %c0_i32_0 : i32, i32, i32
  }
}

</mosaic_0001>

<bundles_post_ra>
// kernel: tpu_custom_call.1
= control target key start
LH: loop header
LB: loop body
LE: loop exit
PB: predicated region body
PF: predicated region fallthrough
CT: control target
= control target key end

     0   :  { %12 = vsyncpa [#allocation3], 0  ;;  %s625_s0 = inlined_call_operand.hbm [shape: f32[3,8,128], index: 0, kind: input, shape index: {}]   ;;  %s626_s1 = inlined_call_operand.hbm [shape: f32[3,3], index: 1, kind: input, shape index: {}]   ;;  %s627_s2 = inlined_call_operand.hbm [shape: f32[3], index: 2, kind: input, shape index: {}]   ;;  %s628_s3 = inlined_call_operand.hbm [shape: f32[3,3], index: 3, kind: input, shape index: {}]   ;;  %s629_s4 = inlined_call_operand.hbm [shape: f32[3], index: 4, kind: input, shape index: {}]   ;;  %s630_s5 = inlined_call_operand.vmem [shape: f32[3,3], index: 5, kind: input, shape index: {}]   ;;  %s631_s6 = inlined_call_operand.vmem [shape: f32[3], index: 6, kind: input, shape index: {}]   ;;  %s632_s7 = inlined_call_operand.hbm [shape: f32[3,8,128], index: 7, kind: output, shape index: {}]  }
   0x1   :  { %13 = vsyncpa [#allocation5], 0 }
   0x2   :  { %14 = vsyncpa [#allocation9], 0 }
   0x3   :  { %15 = vsyncpa [#allocation12], 0 }
   0x4   :  { %16 = vsyncpa [#allocation6], 0 }
   0x5   :  { %17 = vsyncpa [#allocation15], 0  ;;  %s46_s26 = sshll.u32 %s627_s2, 4  ;;  %s47_s26 = int_to_ptr.hbm [resolvable:$true] %s46_s26 }
   0x6   :  { %18 = vsyncpa [#allocation4], 0  ;;  %s23_s29 = sshll.u32 %s625_s0, 4  ;;  %s470_s30 = smov [#allocation8]   ;;  %s24_s29 = int_to_ptr.hbm [resolvable:$true] %s23_s29 }
   0x7   :  { %49 = dma.hbm_to_smem %s47_s26, 16, %s470_s30, [#allocation9]  }
   0x8   :  { %s471_s8 = smov [#allocation2]   ;;  %s472_s10 = smov 128  }
   0x9   :  { %s25_s9 = sshll.u32 %s471_s8, 4  ;;  %s473_s11 = smov 8   ;;  %s26_s9 = int_to_ptr.vmem [resolvable:$true] %s25_s9 }
   0xa   :  { %31 = dma.hbm_to_vmem [thread:$0]  %s24_s29, 384, %s26_s9, [#allocation3], %s472_s10, %s472_s10, %s473_s11  }
   0xb   :  { %s37_s13 = sshll.u32 %s626_s1, 4  ;;  %s55_s0 = sshll.u32 %s628_s3, 4  ;;  %s38_s13 = int_to_ptr.hbm [resolvable:$true] %s37_s13  ;;  %s56_s0 = int_to_ptr.hbm [resolvable:$true] %s55_s0 }
   0xc   :  { %s474_s16 = smov [#allocation7]   ;;  %s475_s17 = smov [#allocation10]  }
   0xd   :  { %40 = dma.hbm_to_smem %s38_s13, 64, %s474_s16, [#allocation5]  }
   0xe   :  { %58 = dma.hbm_to_smem %s56_s0, 64, %s475_s17, [#allocation9]  }
   0xf   :  { %s64_s20 = sshll.u32 %s629_s4, 4  ;;  %s73_s23 = sshll.u32 %s630_s5, 4  ;;  %s65_s20 = int_to_ptr.hbm [resolvable:$true] %s64_s20  ;;  %s74_s23 = int_to_ptr.vmem [resolvable:$true] %s73_s23 }
  0x10   :  { %s476_s1 = smov [#allocation11]   ;;  %s477_s24 = smov [#allocation13]  }
  0x11   :  { %67 = dma.hbm_to_smem %s65_s20, 16, %s476_s1, [#allocation12]  }
  0x12   :  { %76 = dma.vmem_to_smem %s74_s23, 64, %s477_s24, [#allocation6]  }
  0x13   :  { %s82_s26 = sshll.u32 %s631_s6, 4  ;;  %s478_s27 = smov [#allocation14]   ;;  %s83_s26 = int_to_ptr.vmem [resolvable:$true] %s82_s26 }
  0x14   :  { %85 = dma.vmem_to_smem %s83_s26, 16, %s478_s27, [#allocation15]  }
  0x15   :  { %456 = dma.done.wait [#allocation3], 384  }
  0x16   :  { %457 = vsyncadd [#allocation3], 4294966912 }
  0x17   :  { %458 = dma.done.wait [#allocation5], 64  }
  0x18   :  { %459 = vsyncadd [#allocation5], 4294967232 }
  0x19   :  { %460 = dma.done.wait [#allocation9], 80  }
  0x1a   :  { %461 = vsyncadd [#allocation9], 4294967216 }
  0x1b   :  { %462 = dma.done.wait [#allocation12], 16  }
  0x1c   :  { %463 = vsyncadd [#allocation12], 4294967280 }
  0x1d   :  { %464 = dma.done.wait [#allocation6], 64  }
  0x1e   :  { %465 = vsyncadd [#allocation6], 4294967232 }
  0x1f   :  { %466 = dma.done.wait [#allocation15], 16  }
  0x20   :  { %467 = vsyncadd [#allocation15], 4294967280 }
  0x21   :  { %114 = sfence }
  0x22   :  { %s115_s4 = sld [smem:[#allocation7]]  ;;  %v151_v0 = vld [vmem:[#allocation2] sm:$0xff]  ;;  %v153_v3 = vld [vmem:[#allocation2 + $0x8] sm:$0xff]  ;;  %v155_v8 = vld [vmem:[#allocation2 + $0x10] sm:$0xff] }
  0x23   :  { %s290_s5 = sld [smem:[#allocation7 + $0x1]] }
  0x24   :  { %s291_s28 = sld [smem:[#allocation7 + $0x2]] }
  0x25   :  { %s292_s6 = sld [smem:[#allocation7 + $0x80]] }
  0x26   :  { %s293_s29 = sld [smem:[#allocation7 + $0x81]] }
  0x27   :  { %s544_s30 = sld [smem:[#allocation7 + $0x82]] }
  0x28   :  { %s295_s8 = sld [smem:[#allocation7 + $0x100]]  ;;  %v156_v1 = vstv %s115_s4 }
  0x29   :  { %s546_s9 = sld [smem:[#allocation7 + $0x101]]  ;;  %v166_v2 = vstv %s290_s5  ;;  %v157_v6 = vmul.f32 %v156_v1, %v151_v0 }
  0x2a   :  { %s548_s12 = sld [smem:[#allocation7 + $0x102]]  ;;  %v176_v5 = vstv %s291_s28  ;;  %v167_v10 = vmul.f32 %v166_v2, %v151_v0 }
  0x2b   :  { %s124_s2 = sld [smem:[#allocation8]]  ;;  %v160_v4 = vstv %s292_s6  ;;  %v177_v14 = vmul.f32 %v176_v5, %v151_v0 }
  0x2c   :  { %s298_s13 = sld [smem:[#allocation8 + $0x1]]  ;;  %v170_v7 = vstv %s293_s29  ;;  %v161_v12 = vmul.f32 %v160_v4, %v153_v3 }
  0x2d   :  { %s550_s14 = sld [smem:[#allocation8 + $0x2]]  ;;  %v180_v11 = vstv %s544_s30  ;;  %v171_v16 = vmul.f32 %v170_v7, %v153_v3 }
  0x2e   :  { %s552_s15 = sld [smem:[#allocation10]]  ;;  %v163_v9 = vstv %s295_s8  ;;  %v181_v21 = vmul.f32 %v180_v11, %v153_v3 }
  0x2f   :  { %s554_s0 = sld [smem:[#allocation10 + $0x1]]  ;;  %v173_v13 = vstv %s546_s9  ;;  %v164_v19 = vmul.f32 %v163_v9, %v155_v8 }
  0x30   :  { %s557_s16 = sld [smem:[#allocation10 + $0x2]]  ;;  %v183_v17 = vstv %s548_s12  ;;  %v174_v23 = vmul.f32 %v173_v13, %v155_v8  ;;  %s479_s12 = smov [#allocation16]  }
  0x31   :  { %s560_s17 = sld [smem:[#allocation10 + $0x80]]  ;;  %v158_v15 = vstv %s124_s2  ;;  %v184_v27 = vmul.f32 %v183_v17, %v155_v8  ;;  %s270_s2 = sshll.u32 %s479_s12, 4  ;;  %s271_s2 = int_to_ptr.vmem [resolvable:$true] %s270_s2 }
  0x32   :  { %s563_s18 = sld [smem:[#allocation10 + $0x81]]  ;;  %v159_v18 = vadd.f32 %v158_v15, %v157_v6  ;;  %v168_v20 = vstv %s298_s13 }
  0x33   :  { %s565_s19 = sld [smem:[#allocation10 + $0x82]]  ;;  %v169_v22 = vadd.f32 %v168_v20, %v167_v10  ;;  %v178_v24 = vstv %s550_s14 }
  0x34   :  { %s568_s20 = sld [smem:[#allocation10 + $0x100]]  ;;  %v162_v25 = vadd.f32 %v161_v12, %v159_v18  ;;  %v179_v26 = vadd.f32 %v178_v24, %v177_v14  ;;  %v192_v35 = vstv %s552_s15  ;;  %s272_s15 = sshll.u32 %s632_s7, 4  ;;  %s273_s15 = int_to_ptr.hbm [resolvable:$true] %s272_s15 }
  0x35   :  { %s570_s21 = sld [smem:[#allocation10 + $0x101]]  ;;  %v172_v28 = vadd.f32 %v171_v16, %v169_v22  ;;  %v202_v36 = vstv %s554_s0 }
  0x36   :  { %s572_s22 = sld [smem:[#allocation10 + $0x102]]  ;;  %v165_v29 = vadd.f32 %v164_v19, %v162_v25  ;;  %v182_v30 = vadd.f32 %v181_v21, %v179_v26  ;;  %v212_v37 = vstv %s557_s16 }
  0x37   :  { %s136_s23 = sld [smem:[#allocation11]]  ;;  %v175_v31 = vadd.f32 %v174_v23, %v172_v28  ;;  %v196_v40 = vstv %s560_s17 }
  0x38   :  { %s574_s1 = sld [smem:[#allocation11 + $0x1]]  ;;  %v185_v32 = vadd.f32 %v184_v27, %v182_v30  ;;  %v186_v33 = vmul.f32 0.01, %v165_v29  ;;  %v206_v41 = vstv %s563_s18 }
  0x39   :  { %s576_s24 = sld [smem:[#allocation11 + $0x2]]  ;;  %v188_v34 = vmul.f32 0.01, %v175_v31  ;;  %v216_v45 = vstv %s565_s19 }
  0x3a   :  { %s581_s3 = sld [smem:[#allocation13]]  ;;  %v187_v38 = vmax.f32 %v165_v29, %v186_v33  ;;  %v190_v39 = vmul.f32 0.01, %v185_v32  ;;  %v199_v43 = vstv %s568_s20 }
  0x3b   :  { %s585_s25 = sld [smem:[#allocation13 + $0x80]]  ;;  %v189_v42 = vmax.f32 %v175_v31, %v188_v34  ;;  %v209_v44 = vstv %s570_s21 }
  0x3c   :  { %s590_s26 = sld [smem:[#allocation13 + $0x100]]  ;;  %v191_v46 = vmax.f32 %v185_v32, %v190_v39  ;;  %v193_v47 = vmul.f32 %v192_v35, %v187_v38  ;;  %v203_v48 = vmul.f32 %v202_v36, %v187_v38  ;;  %v213_v49 = vmul.f32 %v212_v37, %v187_v38 }
  0x3d   :  { %s592_s27 = sld [smem:[#allocation14]]  ;;  %v194_v50 = vstv %s136_s23  ;;  %v197_v51 = vmul.f32 %v196_v40, %v189_v42  ;;  %v207_v52 = vmul.f32 %v206_v41, %v189_v42  ;;  %v217_v56 = vmul.f32 %v216_v45, %v189_v42 }
  0x3e   :  { %v195_v53 = vadd.f32 %v194_v50, %v193_v47  ;;  %v200_v54 = vmul.f32 %v199_v43, %v191_v46  ;;  %v204_v55 = vstv %s574_s1  ;;  %s595_s4 = sld [smem:[#allocation13 + $0x1]]  ;;  %v210_v58 = vmul.f32 %v209_v44, %v191_v46 }
  0x3f   :  { %v205_v57 = vadd.f32 %v204_v55, %v203_v48  ;;  %v214_v59 = vstv %s576_s24  ;;  %v219_v60 = vstv %s572_s22  ;;  %s599_s5 = sld [smem:[#allocation13 + $0x81]] }
  0x40   :  { %v198_v61 = vadd.f32 %v197_v51, %v195_v53  ;;  %v215_v62 = vadd.f32 %v214_v59, %v213_v49  ;;  %v220_v63 = vmul.f32 %v219_v60, %v191_v46  ;;  %s601_s28 = sld [smem:[#allocation13 + $0x101]]  ;;  %v228_v7 = vstv %s581_s3 }
  0x41   :  { %v208_v0 = vadd.f32 %v207_v52, %v205_v57  ;;  %s603_s6 = sld [smem:[#allocation14 + $0x1]]  ;;  %v232_v8 = vstv %s585_s25 }
  0x42   :  { %v201_v1 = vadd.f32 %v200_v54, %v198_v61  ;;  %v218_v2 = vadd.f32 %v217_v56, %v215_v62  ;;  %s311_s29 = sld [smem:[#allocation13 + $0x2]]  ;;  %v235_v12 = vstv %s590_s26 }
  0x43   :  { %v211_v3 = vadd.f32 %v210_v58, %v208_v0  ;;  %s605_s30 = sld [smem:[#allocation13 + $0x82]]  ;;  %v230_v15 = vstv %s592_s27 }
  0x44   :  { %v221_v4 = vadd.f32 %v220_v63, %v218_v2  ;;  %v222_v5 = vmul.f32 0.01, %v201_v1  ;;  %s607_s8 = sld [smem:[#allocation13 + $0x102]]  ;;  %v238_v9 = vstv %s595_s4 }
  0x45   :  { %v224_v6 = vmul.f32 0.01, %v211_v3  ;;  %s319_s9 = sld [smem:[#allocation14 + $0x2]]  ;;  %v242_v13 = vstv %s599_s5 }
  0x46   :  { %v223_v10 = vmax.f32 %v201_v1, %v222_v5  ;;  %v226_v11 = vmul.f32 0.01, %v221_v4  ;;  %v245_v17 = vstv %s601_s28 }
  0x47   :  { %v225_v14 = vmax.f32 %v211_v3, %v224_v6  ;;  %v240_v16 = vstv %s603_s6 }
  0x48   :  { %v227_v18 = vmax.f32 %v221_v4, %v226_v11  ;;  %v229_v19 = vmul.f32 %v228_v7, %v223_v10  ;;  %v239_v20 = vmul.f32 %v238_v9, %v223_v10  ;;  %v248_v21 = vstv %s311_s29 }
  0x49   :  { %v233_v22 = vmul.f32 %v232_v8, %v225_v14  ;;  %v243_v23 = vmul.f32 %v242_v13, %v225_v14  ;;  %v249_v24 = vmul.f32 %v248_v21, %v223_v10  ;;  %v252_v25 = vstv %s605_s30 }
  0x4a   :  { %v231_v26 = vadd.f32 %v230_v15, %v229_v19  ;;  %v236_v27 = vmul.f32 %v235_v12, %v227_v18  ;;  %v241_v28 = vadd.f32 %v240_v16, %v239_v20  ;;  %v246_v29 = vmul.f32 %v245_v17, %v227_v18 }
  0x4b   :  { %v250_v30 = vstv %s319_s9  ;;  %v253_v31 = vmul.f32 %v252_v25, %v225_v14  ;;  %v255_v32 = vstv %s607_s8 }
  0x4c   :  { %v234_v33 = vadd.f32 %v233_v22, %v231_v26  ;;  %v244_v34 = vadd.f32 %v243_v23, %v241_v28  ;;  %v251_v35 = vadd.f32 %v250_v30, %v249_v24  ;;  %v256_v36 = vmul.f32 %v255_v32, %v227_v18 }
  0x4e   :  { %v237_v37 = vadd.f32 %v236_v27, %v234_v33  ;;  %v247_v38 = vadd.f32 %v246_v29, %v244_v34  ;;  %v254_v39 = vadd.f32 %v253_v31, %v251_v35 }
  0x50   :  { %330 = vtanh.f32 %v237_v37  ;;  %v257_v40 = vadd.f32 %v256_v36, %v254_v39 }
  0x51   :  { %332 = vtanh.f32 %v247_v38 }
  0x52   :  { %334 = vtanh.f32 %v257_v40 }
  0x56   :  { %v331_v41 = vpop.eup %330 }
  0x57   :  { %v333_v42 = vpop.eup %332  ;;  %259 = vst [vmem:[#allocation16] sm:$0xff] %v331_v41 }
  0x58   :  { %v335_v43 = vpop.eup %334  ;;  %262 = vst [vmem:[#allocation16 + $0x8] sm:$0xff] %v333_v42 }
  0x59   :  { %265 = vst [vmem:[#allocation16 + $0x10] sm:$0xff] %v335_v43 }
  0x5a   :  { %278 = dma.vmem_to_hbm [thread:$0]  %s271_s2, 384, %s273_s15, [#allocation4], %s472_s10, %s472_s10, %s473_s11  }
  0x5b   :  { %468 = dma.done.wait [#allocation4], 384  }
  0x5c   :  { %469 = vsyncadd [#allocation4], 4294966912 }
  0x5d   :  { %283 = vsyncpa [#allocation3], 1 }
  0x5e   :  { %284 = vsyncpa [#allocation4], 1 }
  0x5f   :  { %285 = vsyncpa [#allocation5], 1 }
  0x60   :  { %286 = vsyncpa [#allocation9], 1 }
  0x61   :  { %287 = vsyncpa [#allocation12], 1 }
  0x62   :  { %288 = vsyncpa [#allocation6], 1 }
  0x63   :  { %289 = vsyncpa [#allocation15], 1 }

</bundles_post_ra>
